<compile_context>
chip_gen: v6e
topology: v6e:2x2x1
jax: 0.10.0
libtpu: 0.0.40
codegen_flags: <defaults>
</compile_context>

<pallas_src>
import jax
import jax.numpy as jnp
from jax.experimental import pallas as pl
from jax.experimental.pallas import tpu as pltpu


def _conv1x1_kernel(x_ref, w_ref, b_ref, o_ref):
    # x_ref: (N*Cin, HW)  in VMEM  (HW on the lane axis, rows packed on sublanes)
    # w_ref: (Cin*Cout,)  in SMEM  (scalar weights, w[ci*Cout + co])
    # b_ref: (Cout,)      in SMEM  (scalar bias)
    # o_ref: (N*Cout, HW) in VMEM
    cout = b_ref.shape[0]
    cin = w_ref.shape[0] // cout
    n = x_ref.shape[0] // cin

    # One lane-dense load of the whole (N*Cin, HW) slab (fits in a couple of vregs).
    x = x_ref[...].astype(jnp.float32)

    for b in range(n):
        for co in range(cout):
            acc = x[b * cin + 0, :] * w_ref[0 * cout + co] + b_ref[co]
            for ci in range(1, cin):
                acc = acc + x[b * cin + ci, :] * w_ref[ci * cout + co]
            # Direct lane-dense row store; no stack/relayout of the full output.
            o_ref[b * cout + co, :] = acc.astype(o_ref.dtype)


def conv_transpose_1x1(x_nchw, weight, bias):
    """x_nchw: (N, Cin, H, W); weight: (Cin, Cout, 1, 1) [ConvTranspose2d layout]; bias: (Cout,)."""
    n, cin, h, w = x_nchw.shape
    cout = weight.shape[1]
    hw = h * w

    # Free contiguous reshapes (NCHW order preserved).
    x2 = x_nchw.reshape(n * cin, hw)       # (N*Cin, HW): one dense (8,128k)-style tile
    w_flat = weight.reshape(cin * cout)    # 1-D SMEM: ~Cin*Cout words, no [8,128] padding
    b_vec = bias.reshape(cout)

    itemsize = jnp.dtype(x_nchw.dtype).itemsize
    cost = pl.CostEstimate(
        flops=2 * n * hw * cin * cout,
        transcendentals=0,
        bytes_accessed=(n * cin * hw + n * cout * hw) * itemsize
        + (cin * cout + cout) * 4,
    )

    out2 = pl.pallas_call(
        _conv1x1_kernel,
        out_shape=jax.ShapeDtypeStruct((n * cout, hw), x_nchw.dtype),
        in_specs=[
            pl.BlockSpec(memory_space=pltpu.MemorySpace.VMEM),   # x: whole slab in VMEM
            pl.BlockSpec(memory_space=pltpu.MemorySpace.SMEM),   # weights: 1-D SMEM scalars
            pl.BlockSpec(memory_space=pltpu.MemorySpace.SMEM),   # bias: 1-D SMEM scalars
        ],
        out_specs=pl.BlockSpec(memory_space=pltpu.MemorySpace.VMEM),
        cost_estimate=cost,
    )(x2, w_flat, b_vec)

    return out2.reshape(n, cout, h, w)     # free reshape back to NCHW


def model_forward(x1, weight, bias):
    v1 = conv_transpose_1x1(x1, weight, bias)
    # v2..v11 in the PyTorch module are dead code (the forward returns v1 only).
    return v1


if __name__ == "__main__":
    key = jax.random.PRNGKey(0)
    k_x, k_w, k_b = jax.random.split(key, 3)

    # Small shapes consistent with the module: N=2, Cin=3, H=W=16, Cout=8.
    x1 = jax.random.normal(k_x, (2, 3, 16, 16), dtype=jnp.float32)
    # ConvTranspose2d weight shape: (in_channels, out_channels, kH, kW) = (3, 8, 1, 1)
    weight = jax.random.normal(k_w, (3, 8, 1, 1), dtype=jnp.float32) * 0.1
    bias = jax.random.normal(k_b, (8,), dtype=jnp.float32) * 0.1

    out = model_forward(x1, weight, bias)
    jax.block_until_ready(out)

    # Sanity check against plain-JAX reference.
    ref = (
        jnp.einsum("nihw,io->nohw", x1, weight.reshape(3, 8))
        + bias.reshape(1, 8, 1, 1)
    )
    assert out.shape == (2, 8, 16, 16)
    assert jnp.allclose(out, ref, atol=1e-5), "mismatch vs reference"

    print("KERNEL_OK")
</pallas_src>

<mosaic_0001>
module attributes {stable_mosaic.version = 11 : i64} {
  func.func @_conv1x1_kernel(%arg0: memref<6x256xf32, #tpu.memory_space<vmem>>, %arg1: memref<24xf32, #tpu.memory_space<smem>>, %arg2: memref<8xf32, #tpu.memory_space<smem>>, %arg3: memref<16x256xf32, #tpu.memory_space<vmem>>) attributes {dimension_semantics = [], scalar_prefetch = 0 : i64, scratch_operands = 0 : i64, tpu.core_type = #tpu.core_type<tc>} {
    %c0 = arith.constant 0 : index
    %c0_0 = arith.constant 0 : index
    %0 = vector.load %arg0[%c0, %c0_0] : memref<6x256xf32, #tpu.memory_space<vmem>>, vector<6x256xf32>
    %1 = vector.extract_strided_slice %0 {offsets = [0, 0], sizes = [1, 256], strides = [1, 1]} : vector<6x256xf32> to vector<1x256xf32>
    %2 = vector.shape_cast %1 : vector<1x256xf32> to vector<256xf32>
    %c0_1 = arith.constant 0 : index
    %3 = memref.load %arg1[%c0_1] : memref<24xf32, #tpu.memory_space<smem>>
    %4 = vector.broadcast %3 : f32 to vector<256xf32>
    %5 = arith.mulf %2, %4 : vector<256xf32>
    %c0_2 = arith.constant 0 : index
    %6 = memref.load %arg2[%c0_2] : memref<8xf32, #tpu.memory_space<smem>>
    %7 = vector.broadcast %6 : f32 to vector<256xf32>
    %8 = arith.addf %5, %7 : vector<256xf32>
    %9 = vector.extract_strided_slice %0 {offsets = [1, 0], sizes = [1, 256], strides = [1, 1]} : vector<6x256xf32> to vector<1x256xf32>
    %10 = vector.shape_cast %9 : vector<1x256xf32> to vector<256xf32>
    %c8 = arith.constant 8 : index
    %11 = memref.load %arg1[%c8] : memref<24xf32, #tpu.memory_space<smem>>
    %12 = vector.broadcast %11 : f32 to vector<256xf32>
    %13 = arith.mulf %10, %12 : vector<256xf32>
    %14 = arith.addf %8, %13 : vector<256xf32>
    %15 = vector.extract_strided_slice %0 {offsets = [2, 0], sizes = [1, 256], strides = [1, 1]} : vector<6x256xf32> to vector<1x256xf32>
    %16 = vector.shape_cast %15 : vector<1x256xf32> to vector<256xf32>
    %c16 = arith.constant 16 : index
    %17 = memref.load %arg1[%c16] : memref<24xf32, #tpu.memory_space<smem>>
    %18 = vector.broadcast %17 : f32 to vector<256xf32>
    %19 = arith.mulf %16, %18 : vector<256xf32>
    %20 = arith.addf %14, %19 : vector<256xf32>
    %c0_3 = arith.constant 0 : index
    %c0_4 = arith.constant 0 : index
    %21 = vector.load %arg3[%c0_3, %c0_4] : memref<16x256xf32, #tpu.memory_space<vmem>>, vector<1x256xf32>
    %22 = vector.shape_cast %21 : vector<1x256xf32> to vector<256xf32>
    %23 = vector.shape_cast %20 : vector<256xf32> to vector<1x256xf32>
    tpu.vector_store %arg3[%c0_3, %c0_4], %23 {strides = array<i32>} : memref<16x256xf32, #tpu.memory_space<vmem>>, vector<1x256xf32>,
    %24 = vector.extract_strided_slice %0 {offsets = [0, 0], sizes = [1, 256], strides = [1, 1]} : vector<6x256xf32> to vector<1x256xf32>
    %25 = vector.shape_cast %24 : vector<1x256xf32> to vector<256xf32>
    %c1 = arith.constant 1 : index
    %26 = memref.load %arg1[%c1] : memref<24xf32, #tpu.memory_space<smem>>
    %27 = vector.broadcast %26 : f32 to vector<256xf32>
    %28 = arith.mulf %25, %27 : vector<256xf32>
    %c1_5 = arith.constant 1 : index
    %29 = memref.load %arg2[%c1_5] : memref<8xf32, #tpu.memory_space<smem>>
    %30 = vector.broadcast %29 : f32 to vector<256xf32>
    %31 = arith.addf %28, %30 : vector<256xf32>
    %32 = vector.extract_strided_slice %0 {offsets = [1, 0], sizes = [1, 256], strides = [1, 1]} : vector<6x256xf32> to vector<1x256xf32>
    %33 = vector.shape_cast %32 : vector<1x256xf32> to vector<256xf32>
    %c9 = arith.constant 9 : index
    %34 = memref.load %arg1[%c9] : memref<24xf32, #tpu.memory_space<smem>>
    %35 = vector.broadcast %34 : f32 to vector<256xf32>
    %36 = arith.mulf %33, %35 : vector<256xf32>
    %37 = arith.addf %31, %36 : vector<256xf32>
    %38 = vector.extract_strided_slice %0 {offsets = [2, 0], sizes = [1, 256], strides = [1, 1]} : vector<6x256xf32> to vector<1x256xf32>
    %39 = vector.shape_cast %38 : vector<1x256xf32> to vector<256xf32>
    %c17 = arith.constant 17 : index
    %40 = memref.load %arg1[%c17] : memref<24xf32, #tpu.memory_space<smem>>
    %41 = vector.broadcast %40 : f32 to vector<256xf32>
    %42 = arith.mulf %39, %41 : vector<256xf32>
    %43 = arith.addf %37, %42 : vector<256xf32>
    %c1_6 = arith.constant 1 : index
    %c0_7 = arith.constant 0 : index
    %44 = vector.load %arg3[%c1_6, %c0_7] : memref<16x256xf32, #tpu.memory_space<vmem>>, vector<1x256xf32>
    %45 = vector.shape_cast %44 : vector<1x256xf32> to vector<256xf32>
    %46 = vector.shape_cast %43 : vector<256xf32> to vector<1x256xf32>
    tpu.vector_store %arg3[%c1_6, %c0_7], %46 {strides = array<i32>} : memref<16x256xf32, #tpu.memory_space<vmem>>, vector<1x256xf32>,
    %47 = vector.extract_strided_slice %0 {offsets = [0, 0], sizes = [1, 256], strides = [1, 1]} : vector<6x256xf32> to vector<1x256xf32>
    %48 = vector.shape_cast %47 : vector<1x256xf32> to vector<256xf32>
    %c2 = arith.constant 2 : index
    %49 = memref.load %arg1[%c2] : memref<24xf32, #tpu.memory_space<smem>>
    %50 = vector.broadcast %49 : f32 to vector<256xf32>
    %51 = arith.mulf %48, %50 : vector<256xf32>
    %c2_8 = arith.constant 2 : index
    %52 = memref.load %arg2[%c2_8] : memref<8xf32, #tpu.memory_space<smem>>
    %53 = vector.broadcast %52 : f32 to vector<256xf32>
    %54 = arith.addf %51, %53 : vector<256xf32>
    %55 = vector.extract_strided_slice %0 {offsets = [1, 0], sizes = [1, 256], strides = [1, 1]} : vector<6x256xf32> to vector<1x256xf32>
    %56 = vector.shape_cast %55 : vector<1x256xf32> to vector<256xf32>
    %c10 = arith.constant 10 : index
    %57 = memref.load %arg1[%c10] : memref<24xf32, #tpu.memory_space<smem>>
    %58 = vector.broadcast %57 : f32 to vector<256xf32>
    %59 = arith.mulf %56, %58 : vector<256xf32>
    %60 = arith.addf %54, %59 : vector<256xf32>
    %61 = vector.extract_strided_slice %0 {offsets = [2, 0], sizes = [1, 256], strides = [1, 1]} : vector<6x256xf32> to vector<1x256xf32>
    %62 = vector.shape_cast %61 : vector<1x256xf32> to vector<256xf32>
    %c18 = arith.constant 18 : index
    %63 = memref.load %arg1[%c18] : memref<24xf32, #tpu.memory_space<smem>>
    %64 = vector.broadcast %63 : f32 to vector<256xf32>
    %65 = arith.mulf %62, %64 : vector<256xf32>
    %66 = arith.addf %60, %65 : vector<256xf32>
    %c2_9 = arith.constant 2 : index
    %c0_10 = arith.constant 0 : index
    %67 = vector.load %arg3[%c2_9, %c0_10] : memref<16x256xf32, #tpu.memory_space<vmem>>, vector<1x256xf32>
    %68 = vector.shape_cast %67 : vector<1x256xf32> to vector<256xf32>
    %69 = vector.shape_cast %66 : vector<256xf32> to vector<1x256xf32>
    tpu.vector_store %arg3[%c2_9, %c0_10], %69 {strides = array<i32>} : memref<16x256xf32, #tpu.memory_space<vmem>>, vector<1x256xf32>,
    %70 = vector.extract_strided_slice %0 {offsets = [0, 0], sizes = [1, 256], strides = [1, 1]} : vector<6x256xf32> to vector<1x256xf32>
    %71 = vector.shape_cast %70 : vector<1x256xf32> to vector<256xf32>
    %c3 = arith.constant 3 : index
    %72 = memref.load %arg1[%c3] : memref<24xf32, #tpu.memory_space<smem>>
    %73 = vector.broadcast %72 : f32 to vector<256xf32>
    %74 = arith.mulf %71, %73 : vector<256xf32>
    %c3_11 = arith.constant 3 : index
    %75 = memref.load %arg2[%c3_11] : memref<8xf32, #tpu.memory_space<smem>>
    %76 = vector.broadcast %75 : f32 to vector<256xf32>
    %77 = arith.addf %74, %76 : vector<256xf32>
    %78 = vector.extract_strided_slice %0 {offsets = [1, 0], sizes = [1, 256], strides = [1, 1]} : vector<6x256xf32> to vector<1x256xf32>
    %79 = vector.shape_cast %78 : vector<1x256xf32> to vector<256xf32>
    %c11 = arith.constant 11 : index
    %80 = memref.load %arg1[%c11] : memref<24xf32, #tpu.memory_space<smem>>
    %81 = vector.broadcast %80 : f32 to vector<256xf32>
    %82 = arith.mulf %79, %81 : vector<256xf32>
    %83 = arith.addf %77, %82 : vector<256xf32>
    %84 = vector.extract_strided_slice %0 {offsets = [2, 0], sizes = [1, 256], strides = [1, 1]} : vector<6x256xf32> to vector<1x256xf32>
    %85 = vector.shape_cast %84 : vector<1x256xf32> to vector<256xf32>
    %c19 = arith.constant 19 : index
    %86 = memref.load %arg1[%c19] : memref<24xf32, #tpu.memory_space<smem>>
    %87 = vector.broadcast %86 : f32 to vector<256xf32>
    %88 = arith.mulf %85, %87 : vector<256xf32>
    %89 = arith.addf %83, %88 : vector<256xf32>
    %c3_12 = arith.constant 3 : index
    %c0_13 = arith.constant 0 : index
    %90 = vector.load %arg3[%c3_12, %c0_13] : memref<16x256xf32, #tpu.memory_space<vmem>>, vector<1x256xf32>
    %91 = vector.shape_cast %90 : vector<1x256xf32> to vector<256xf32>
    %92 = vector.shape_cast %89 : vector<256xf32> to vector<1x256xf32>
    tpu.vector_store %arg3[%c3_12, %c0_13], %92 {strides = array<i32>} : memref<16x256xf32, #tpu.memory_space<vmem>>, vector<1x256xf32>,
    %93 = vector.extract_strided_slice %0 {offsets = [0, 0], sizes = [1, 256], strides = [1, 1]} : vector<6x256xf32> to vector<1x256xf32>
    %94 = vector.shape_cast %93 : vector<1x256xf32> to vector<256xf32>
    %c4 = arith.constant 4 : index
    %95 = memref.load %arg1[%c4] : memref<24xf32, #tpu.memory_space<smem>>
    %96 = vector.broadcast %95 : f32 to vector<256xf32>
    %97 = arith.mulf %94, %96 : vector<256xf32>
    %c4_14 = arith.constant 4 : index
    %98 = memref.load %arg2[%c4_14] : memref<8xf32, #tpu.memory_space<smem>>
    %99 = vector.broadcast %98 : f32 to vector<256xf32>
    %100 = arith.addf %97, %99 : vector<256xf32>
    %101 = vector.extract_strided_slice %0 {offsets = [1, 0], sizes = [1, 256], strides = [1, 1]} : vector<6x256xf32> to vector<1x256xf32>
    %102 = vector.shape_cast %101 : vector<1x256xf32> to vector<256xf32>
    %c12 = arith.constant 12 : index
    %103 = memref.load %arg1[%c12] : memref<24xf32, #tpu.memory_space<smem>>
    %104 = vector.broadcast %103 : f32 to vector<256xf32>
    %105 = arith.mulf %102, %104 : vector<256xf32>
    %106 = arith.addf %100, %105 : vector<256xf32>
    %107 = vector.extract_strided_slice %0 {offsets = [2, 0], sizes = [1, 256], strides = [1, 1]} : vector<6x256xf32> to vector<1x256xf32>
    %108 = vector.shape_cast %107 : vector<1x256xf32> to vector<256xf32>
    %c20 = arith.constant 20 : index
    %109 = memref.load %arg1[%c20] : memref<24xf32, #tpu.memory_space<smem>>
    %110 = vector.broadcast %109 : f32 to vector<256xf32>
    %111 = arith.mulf %108, %110 : vector<256xf32>
    %112 = arith.addf %106, %111 : vector<256xf32>
    %c4_15 = arith.constant 4 : index
    %c0_16 = arith.constant 0 : index
    %113 = vector.load %arg3[%c4_15, %c0_16] : memref<16x256xf32, #tpu.memory_space<vmem>>, vector<1x256xf32>
    %114 = vector.shape_cast %113 : vector<1x256xf32> to vector<256xf32>
    %115 = vector.shape_cast %112 : vector<256xf32> to vector<1x256xf32>
    tpu.vector_store %arg3[%c4_15, %c0_16], %115 {strides = array<i32>} : memref<16x256xf32, #tpu.memory_space<vmem>>, vector<1x256xf32>,
    %116 = vector.extract_strided_slice %0 {offsets = [0, 0], sizes = [1, 256], strides = [1, 1]} : vector<6x256xf32> to vector<1x256xf32>
    %117 = vector.shape_cast %116 : vector<1x256xf32> to vector<256xf32>
    %c5 = arith.constant 5 : index
    %118 = memref.load %arg1[%c5] : memref<24xf32, #tpu.memory_space<smem>>
    %119 = vector.broadcast %118 : f32 to vector<256xf32>
    %120 = arith.mulf %117, %119 : vector<256xf32>
    %c5_17 = arith.constant 5 : index
    %121 = memref.load %arg2[%c5_17] : memref<8xf32, #tpu.memory_space<smem>>
    %122 = vector.broadcast %121 : f32 to vector<256xf32>
    %123 = arith.addf %120, %122 : vector<256xf32>
    %124 = vector.extract_strided_slice %0 {offsets = [1, 0], sizes = [1, 256], strides = [1, 1]} : vector<6x256xf32> to vector<1x256xf32>
    %125 = vector.shape_cast %124 : vector<1x256xf32> to vector<256xf32>
    %c13 = arith.constant 13 : index
    %126 = memref.load %arg1[%c13] : memref<24xf32, #tpu.memory_space<smem>>
    %127 = vector.broadcast %126 : f32 to vector<256xf32>
    %128 = arith.mulf %125, %127 : vector<256xf32>
    %129 = arith.addf %123, %128 : vector<256xf32>
    %130 = vector.extract_strided_slice %0 {offsets = [2, 0], sizes = [1, 256], strides = [1, 1]} : vector<6x256xf32> to vector<1x256xf32>
    %131 = vector.shape_cast %130 : vector<1x256xf32> to vector<256xf32>
    %c21 = arith.constant 21 : index
    %132 = memref.load %arg1[%c21] : memref<24xf32, #tpu.memory_space<smem>>
    %133 = vector.broadcast %132 : f32 to vector<256xf32>
    %134 = arith.mulf %131, %133 : vector<256xf32>
    %135 = arith.addf %129, %134 : vector<256xf32>
    %c5_18 = arith.constant 5 : index
    %c0_19 = arith.constant 0 : index
    %136 = vector.load %arg3[%c5_18, %c0_19] : memref<16x256xf32, #tpu.memory_space<vmem>>, vector<1x256xf32>
    %137 = vector.shape_cast %136 : vector<1x256xf32> to vector<256xf32>
    %138 = vector.shape_cast %135 : vector<256xf32> to vector<1x256xf32>
    tpu.vector_store %arg3[%c5_18, %c0_19], %138 {strides = array<i32>} : memref<16x256xf32, #tpu.memory_space<vmem>>, vector<1x256xf32>,
    %139 = vector.extract_strided_slice %0 {offsets = [0, 0], sizes = [1, 256], strides = [1, 1]} : vector<6x256xf32> to vector<1x256xf32>
    %140 = vector.shape_cast %139 : vector<1x256xf32> to vector<256xf32>
    %c6 = arith.constant 6 : index
    %141 = memref.load %arg1[%c6] : memref<24xf32, #tpu.memory_space<smem>>
    %142 = vector.broadcast %141 : f32 to vector<256xf32>
    %143 = arith.mulf %140, %142 : vector<256xf32>
    %c6_20 = arith.constant 6 : index
    %144 = memref.load %arg2[%c6_20] : memref<8xf32, #tpu.memory_space<smem>>
    %145 = vector.broadcast %144 : f32 to vector<256xf32>
    %146 = arith.addf %143, %145 : vector<256xf32>
    %147 = vector.extract_strided_slice %0 {offsets = [1, 0], sizes = [1, 256], strides = [1, 1]} : vector<6x256xf32> to vector<1x256xf32>
    %148 = vector.shape_cast %147 : vector<1x256xf32> to vector<256xf32>
    %c14 = arith.constant 14 : index
    %149 = memref.load %arg1[%c14] : memref<24xf32, #tpu.memory_space<smem>>
    %150 = vector.broadcast %149 : f32 to vector<256xf32>
    %151 = arith.mulf %148, %150 : vector<256xf32>
    %152 = arith.addf %146, %151 : vector<256xf32>
    %153 = vector.extract_strided_slice %0 {offsets = [2, 0], sizes = [1, 256], strides = [1, 1]} : vector<6x256xf32> to vector<1x256xf32>
    %154 = vector.shape_cast %153 : vector<1x256xf32> to vector<256xf32>
    %c22 = arith.constant 22 : index
    %155 = memref.load %arg1[%c22] : memref<24xf32, #tpu.memory_space<smem>>
    %156 = vector.broadcast %155 : f32 to vector<256xf32>
    %157 = arith.mulf %154, %156 : vector<256xf32>
    %158 = arith.addf %152, %157 : vector<256xf32>
    %c6_21 = arith.constant 6 : index
    %c0_22 = arith.constant 0 : index
    %159 = vector.load %arg3[%c6_21, %c0_22] : memref<16x256xf32, #tpu.memory_space<vmem>>, vector<1x256xf32>
    %160 = vector.shape_cast %159 : vector<1x256xf32> to vector<256xf32>
    %161 = vector.shape_cast %158 : vector<256xf32> to vector<1x256xf32>
    tpu.vector_store %arg3[%c6_21, %c0_22], %161 {strides = array<i32>} : memref<16x256xf32, #tpu.memory_space<vmem>>, vector<1x256xf32>,
    %162 = vector.extract_strided_slice %0 {offsets = [0, 0], sizes = [1, 256], strides = [1, 1]} : vector<6x256xf32> to vector<1x256xf32>
    %163 = vector.shape_cast %162 : vector<1x256xf32> to vector<256xf32>
    %c7 = arith.constant 7 : index
    %164 = memref.load %arg1[%c7] : memref<24xf32, #tpu.memory_space<smem>>
    %165 = vector.broadcast %164 : f32 to vector<256xf32>
    %166 = arith.mulf %163, %165 : vector<256xf32>
    %c7_23 = arith.constant 7 : index
    %167 = memref.load %arg2[%c7_23] : memref<8xf32, #tpu.memory_space<smem>>
    %168 = vector.broadcast %167 : f32 to vector<256xf32>
    %169 = arith.addf %166, %168 : vector<256xf32>
    %170 = vector.extract_strided_slice %0 {offsets = [1, 0], sizes = [1, 256], strides = [1, 1]} : vector<6x256xf32> to vector<1x256xf32>
    %171 = vector.shape_cast %170 : vector<1x256xf32> to vector<256xf32>
    %c15 = arith.constant 15 : index
    %172 = memref.load %arg1[%c15] : memref<24xf32, #tpu.memory_space<smem>>
    %173 = vector.broadcast %172 : f32 to vector<256xf32>
    %174 = arith.mulf %171, %173 : vector<256xf32>
    %175 = arith.addf %169, %174 : vector<256xf32>
    %176 = vector.extract_strided_slice %0 {offsets = [2, 0], sizes = [1, 256], strides = [1, 1]} : vector<6x256xf32> to vector<1x256xf32>
    %177 = vector.shape_cast %176 : vector<1x256xf32> to vector<256xf32>
    %c23 = arith.constant 23 : index
    %178 = memref.load %arg1[%c23] : memref<24xf32, #tpu.memory_space<smem>>
    %179 = vector.broadcast %178 : f32 to vector<256xf32>
    %180 = arith.mulf %177, %179 : vector<256xf32>
    %181 = arith.addf %175, %180 : vector<256xf32>
    %c7_24 = arith.constant 7 : index
    %c0_25 = arith.constant 0 : index
    %182 = vector.load %arg3[%c7_24, %c0_25] : memref<16x256xf32, #tpu.memory_space<vmem>>, vector<1x256xf32>
    %183 = vector.shape_cast %182 : vector<1x256xf32> to vector<256xf32>
    %184 = vector.shape_cast %181 : vector<256xf32> to vector<1x256xf32>
    tpu.vector_store %arg3[%c7_24, %c0_25], %184 {strides = array<i32>} : memref<16x256xf32, #tpu.memory_space<vmem>>, vector<1x256xf32>,
    %185 = vector.extract_strided_slice %0 {offsets = [3, 0], sizes = [1, 256], strides = [1, 1]} : vector<6x256xf32> to vector<1x256xf32>
    %186 = vector.shape_cast %185 : vector<1x256xf32> to vector<256xf32>
    %c0_26 = arith.constant 0 : index
    %187 = memref.load %arg1[%c0_26] : memref<24xf32, #tpu.memory_space<smem>>
    %188 = vector.broadcast %187 : f32 to vector<256xf32>
    %189 = arith.mulf %186, %188 : vector<256xf32>
    %c0_27 = arith.constant 0 : index
    %190 = memref.load %arg2[%c0_27] : memref<8xf32, #tpu.memory_space<smem>>
    %191 = vector.broadcast %190 : f32 to vector<256xf32>
    %192 = arith.addf %189, %191 : vector<256xf32>
    %193 = vector.extract_strided_slice %0 {offsets = [4, 0], sizes = [1, 256], strides = [1, 1]} : vector<6x256xf32> to vector<1x256xf32>
    %194 = vector.shape_cast %193 : vector<1x256xf32> to vector<256xf32>
    %c8_28 = arith.constant 8 : index
    %195 = memref.load %arg1[%c8_28] : memref<24xf32, #tpu.memory_space<smem>>
    %196 = vector.broadcast %195 : f32 to vector<256xf32>
    %197 = arith.mulf %194, %196 : vector<256xf32>
    %198 = arith.addf %192, %197 : vector<256xf32>
    %199 = vector.extract_strided_slice %0 {offsets = [5, 0], sizes = [1, 256], strides = [1, 1]} : vector<6x256xf32> to vector<1x256xf32>
    %200 = vector.shape_cast %199 : vector<1x256xf32> to vector<256xf32>
    %c16_29 = arith.constant 16 : index
    %201 = memref.load %arg1[%c16_29] : memref<24xf32, #tpu.memory_space<smem>>
    %202 = vector.broadcast %201 : f32 to vector<256xf32>
    %203 = arith.mulf %200, %202 : vector<256xf32>
    %204 = arith.addf %198, %203 : vector<256xf32>
    %c8_30 = arith.constant 8 : index
    %c0_31 = arith.constant 0 : index
    %205 = vector.load %arg3[%c8_30, %c0_31] : memref<16x256xf32, #tpu.memory_space<vmem>>, vector<1x256xf32>
    %206 = vector.shape_cast %205 : vector<1x256xf32> to vector<256xf32>
    %207 = vector.shape_cast %204 : vector<256xf32> to vector<1x256xf32>
    tpu.vector_store %arg3[%c8_30, %c0_31], %207 {strides = array<i32>} : memref<16x256xf32, #tpu.memory_space<vmem>>, vector<1x256xf32>,
    %208 = vector.extract_strided_slice %0 {offsets = [3, 0], sizes = [1, 256], strides = [1, 1]} : vector<6x256xf32> to vector<1x256xf32>
    %209 = vector.shape_cast %208 : vector<1x256xf32> to vector<256xf32>
    %c1_32 = arith.constant 1 : index
    %210 = memref.load %arg1[%c1_32] : memref<24xf32, #tpu.memory_space<smem>>
    %211 = vector.broadcast %210 : f32 to vector<256xf32>
    %212 = arith.mulf %209, %211 : vector<256xf32>
    %c1_33 = arith.constant 1 : index
    %213 = memref.load %arg2[%c1_33] : memref<8xf32, #tpu.memory_space<smem>>
    %214 = vector.broadcast %213 : f32 to vector<256xf32>
    %215 = arith.addf %212, %214 : vector<256xf32>
    %216 = vector.extract_strided_slice %0 {offsets = [4, 0], sizes = [1, 256], strides = [1, 1]} : vector<6x256xf32> to vector<1x256xf32>
    %217 = vector.shape_cast %216 : vector<1x256xf32> to vector<256xf32>
    %c9_34 = arith.constant 9 : index
    %218 = memref.load %arg1[%c9_34] : memref<24xf32, #tpu.memory_space<smem>>
    %219 = vector.broadcast %218 : f32 to vector<256xf32>
    %220 = arith.mulf %217, %219 : vector<256xf32>
    %221 = arith.addf %215, %220 : vector<256xf32>
    %222 = vector.extract_strided_slice %0 {offsets = [5, 0], sizes = [1, 256], strides = [1, 1]} : vector<6x256xf32> to vector<1x256xf32>
    %223 = vector.shape_cast %222 : vector<1x256xf32> to vector<256xf32>
    %c17_35 = arith.constant 17 : index
    %224 = memref.load %arg1[%c17_35] : memref<24xf32, #tpu.memory_space<smem>>
    %225 = vector.broadcast %224 : f32 to vector<256xf32>
    %226 = arith.mulf %223, %225 : vector<256xf32>
    %227 = arith.addf %221, %226 : vector<256xf32>
    %c9_36 = arith.constant 9 : index
    %c0_37 = arith.constant 0 : index
    %228 = vector.load %arg3[%c9_36, %c0_37] : memref<16x256xf32, #tpu.memory_space<vmem>>, vector<1x256xf32>
    %229 = vector.shape_cast %228 : vector<1x256xf32> to vector<256xf32>
    %230 = vector.shape_cast %227 : vector<256xf32> to vector<1x256xf32>
    tpu.vector_store %arg3[%c9_36, %c0_37], %230 {strides = array<i32>} : memref<16x256xf32, #tpu.memory_space<vmem>>, vector<1x256xf32>,
    %231 = vector.extract_strided_slice %0 {offsets = [3, 0], sizes = [1, 256], strides = [1, 1]} : vector<6x256xf32> to vector<1x256xf32>
    %232 = vector.shape_cast %231 : vector<1x256xf32> to vector<256xf32>
    %c2_38 = arith.constant 2 : index
    %233 = memref.load %arg1[%c2_38] : memref<24xf32, #tpu.memory_space<smem>>
    %234 = vector.broadcast %233 : f32 to vector<256xf32>
    %235 = arith.mulf %232, %234 : vector<256xf32>
    %c2_39 = arith.constant 2 : index
    %236 = memref.load %arg2[%c2_39] : memref<8xf32, #tpu.memory_space<smem>>
    %237 = vector.broadcast %236 : f32 to vector<256xf32>
    %238 = arith.addf %235, %237 : vector<256xf32>
    %239 = vector.extract_strided_slice %0 {offsets = [4, 0], sizes = [1, 256], strides = [1, 1]} : vector<6x256xf32> to vector<1x256xf32>
    %240 = vector.shape_cast %239 : vector<1x256xf32> to vector<256xf32>
    %c10_40 = arith.constant 10 : index
    %241 = memref.load %arg1[%c10_40] : memref<24xf32, #tpu.memory_space<smem>>
    %242 = vector.broadcast %241 : f32 to vector<256xf32>
    %243 = arith.mulf %240, %242 : vector<256xf32>
    %244 = arith.addf %238, %243 : vector<256xf32>
    %245 = vector.extract_strided_slice %0 {offsets = [5, 0], sizes = [1, 256], strides = [1, 1]} : vector<6x256xf32> to vector<1x256xf32>
    %246 = vector.shape_cast %245 : vector<1x256xf32> to vector<256xf32>
    %c18_41 = arith.constant 18 : index
    %247 = memref.load %arg1[%c18_41] : memref<24xf32, #tpu.memory_space<smem>>
    %248 = vector.broadcast %247 : f32 to vector<256xf32>
    %249 = arith.mulf %246, %248 : vector<256xf32>
    %250 = arith.addf %244, %249 : vector<256xf32>
    %c10_42 = arith.constant 10 : index
    %c0_43 = arith.constant 0 : index
    %251 = vector.load %arg3[%c10_42, %c0_43] : memref<16x256xf32, #tpu.memory_space<vmem>>, vector<1x256xf32>
    %252 = vector.shape_cast %251 : vector<1x256xf32> to vector<256xf32>
    %253 = vector.shape_cast %250 : vector<256xf32> to vector<1x256xf32>
    tpu.vector_store %arg3[%c10_42, %c0_43], %253 {strides = array<i32>} : memref<16x256xf32, #tpu.memory_space<vmem>>, vector<1x256xf32>,
    %254 = vector.extract_strided_slice %0 {offsets = [3, 0], sizes = [1, 256], strides = [1, 1]} : vector<6x256xf32> to vector<1x256xf32>
    %255 = vector.shape_cast %254 : vector<1x256xf32> to vector<256xf32>
    %c3_44 = arith.constant 3 : index
    %256 = memref.load %arg1[%c3_44] : memref<24xf32, #tpu.memory_space<smem>>
    %257 = vector.broadcast %256 : f32 to vector<256xf32>
    %258 = arith.mulf %255, %257 : vector<256xf32>
    %c3_45 = arith.constant 3 : index
    %259 = memref.load %arg2[%c3_45] : memref<8xf32, #tpu.memory_space<smem>>
    %260 = vector.broadcast %259 : f32 to vector<256xf32>
    %261 = arith.addf %258, %260 : vector<256xf32>
    %262 = vector.extract_strided_slice %0 {offsets = [4, 0], sizes = [1, 256], strides = [1, 1]} : vector<6x256xf32> to vector<1x256xf32>
    %263 = vector.shape_cast %262 : vector<1x256xf32> to vector<256xf32>
    %c11_46 = arith.constant 11 : index
    %264 = memref.load %arg1[%c11_46] : memref<24xf32, #tpu.memory_space<smem>>
    %265 = vector.broadcast %264 : f32 to vector<256xf32>
    %266 = arith.mulf %263, %265 : vector<256xf32>
    %267 = arith.addf %261, %266 : vector<256xf32>
    %268 = vector.extract_strided_slice %0 {offsets = [5, 0], sizes = [1, 256], strides = [1, 1]} : vector<6x256xf32> to vector<1x256xf32>
    %269 = vector.shape_cast %268 : vector<1x256xf32> to vector<256xf32>
    %c19_47 = arith.constant 19 : index
    %270 = memref.load %arg1[%c19_47] : memref<24xf32, #tpu.memory_space<smem>>
    %271 = vector.broadcast %270 : f32 to vector<256xf32>
    %272 = arith.mulf %269, %271 : vector<256xf32>
    %273 = arith.addf %267, %272 : vector<256xf32>
    %c11_48 = arith.constant 11 : index
    %c0_49 = arith.constant 0 : index
    %274 = vector.load %arg3[%c11_48, %c0_49] : memref<16x256xf32, #tpu.memory_space<vmem>>, vector<1x256xf32>
    %275 = vector.shape_cast %274 : vector<1x256xf32> to vector<256xf32>
    %276 = vector.shape_cast %273 : vector<256xf32> to vector<1x256xf32>
    tpu.vector_store %arg3[%c11_48, %c0_49], %276 {strides = array<i32>} : memref<16x256xf32, #tpu.memory_space<vmem>>, vector<1x256xf32>,
    %277 = vector.extract_strided_slice %0 {offsets = [3, 0], sizes = [1, 256], strides = [1, 1]} : vector<6x256xf32> to vector<1x256xf32>
    %278 = vector.shape_cast %277 : vector<1x256xf32> to vector<256xf32>
    %c4_50 = arith.constant 4 : index
    %279 = memref.load %arg1[%c4_50] : memref<24xf32, #tpu.memory_space<smem>>
    %280 = vector.broadcast %279 : f32 to vector<256xf32>
    %281 = arith.mulf %278, %280 : vector<256xf32>
    %c4_51 = arith.constant 4 : index
    %282 = memref.load %arg2[%c4_51] : memref<8xf32, #tpu.memory_space<smem>>
    %283 = vector.broadcast %282 : f32 to vector<256xf32>
    %284 = arith.addf %281, %283 : vector<256xf32>
    %285 = vector.extract_strided_slice %0 {offsets = [4, 0], sizes = [1, 256], strides = [1, 1]} : vector<6x256xf32> to vector<1x256xf32>
    %286 = vector.shape_cast %285 : vector<1x256xf32> to vector<256xf32>
    %c12_52 = arith.constant 12 : index
    %287 = memref.load %arg1[%c12_52] : memref<24xf32, #tpu.memory_space<smem>>
    %288 = vector.broadcast %287 : f32 to vector<256xf32>
    %289 = arith.mulf %286, %288 : vector<256xf32>
    %290 = arith.addf %284, %289 : vector<256xf32>
    %291 = vector.extract_strided_slice %0 {offsets = [5, 0], sizes = [1, 256], strides = [1, 1]} : vector<6x256xf32> to vector<1x256xf32>
    %292 = vector.shape_cast %291 : vector<1x256xf32> to vector<256xf32>
    %c20_53 = arith.constant 20 : index
    %293 = memref.load %arg1[%c20_53] : memref<24xf32, #tpu.memory_space<smem>>
    %294 = vector.broadcast %293 : f32 to vector<256xf32>
    %295 = arith.mulf %292, %294 : vector<256xf32>
    %296 = arith.addf %290, %295 : vector<256xf32>
    %c12_54 = arith.constant 12 : index
    %c0_55 = arith.constant 0 : index
    %297 = vector.load %arg3[%c12_54, %c0_55] : memref<16x256xf32, #tpu.memory_space<vmem>>, vector<1x256xf32>
    %298 = vector.shape_cast %297 : vector<1x256xf32> to vector<256xf32>
    %299 = vector.shape_cast %296 : vector<256xf32> to vector<1x256xf32>
    tpu.vector_store %arg3[%c12_54, %c0_55], %299 {strides = array<i32>} : memref<16x256xf32, #tpu.memory_space<vmem>>, vector<1x256xf32>,
    %300 = vector.extract_strided_slice %0 {offsets = [3, 0], sizes = [1, 256], strides = [1, 1]} : vector<6x256xf32> to vector<1x256xf32>
    %301 = vector.shape_cast %300 : vector<1x256xf32> to vector<256xf32>
    %c5_56 = arith.constant 5 : index
    %302 = memref.load %arg1[%c5_56] : memref<24xf32, #tpu.memory_space<smem>>
    %303 = vector.broadcast %302 : f32 to vector<256xf32>
    %304 = arith.mulf %301, %303 : vector<256xf32>
    %c5_57 = arith.constant 5 : index
    %305 = memref.load %arg2[%c5_57] : memref<8xf32, #tpu.memory_space<smem>>
    %306 = vector.broadcast %305 : f32 to vector<256xf32>
    %307 = arith.addf %304, %306 : vector<256xf32>
    %308 = vector.extract_strided_slice %0 {offsets = [4, 0], sizes = [1, 256], strides = [1, 1]} : vector<6x256xf32> to vector<1x256xf32>
    %309 = vector.shape_cast %308 : vector<1x256xf32> to vector<256xf32>
    %c13_58 = arith.constant 13 : index
    %310 = memref.load %arg1[%c13_58] : memref<24xf32, #tpu.memory_space<smem>>
    %311 = vector.broadcast %310 : f32 to vector<256xf32>
    %312 = arith.mulf %309, %311 : vector<256xf32>
    %313 = arith.addf %307, %312 : vector<256xf32>
    %314 = vector.extract_strided_slice %0 {offsets = [5, 0], sizes = [1, 256], strides = [1, 1]} : vector<6x256xf32> to vector<1x256xf32>
    %315 = vector.shape_cast %314 : vector<1x256xf32> to vector<256xf32>
    %c21_59 = arith.constant 21 : index
    %316 = memref.load %arg1[%c21_59] : memref<24xf32, #tpu.memory_space<smem>>
    %317 = vector.broadcast %316 : f32 to vector<256xf32>
    %318 = arith.mulf %315, %317 : vector<256xf32>
    %319 = arith.addf %313, %318 : vector<256xf32>
    %c13_60 = arith.constant 13 : index
    %c0_61 = arith.constant 0 : index
    %320 = vector.load %arg3[%c13_60, %c0_61] : memref<16x256xf32, #tpu.memory_space<vmem>>, vector<1x256xf32>
    %321 = vector.shape_cast %320 : vector<1x256xf32> to vector<256xf32>
    %322 = vector.shape_cast %319 : vector<256xf32> to vector<1x256xf32>
    tpu.vector_store %arg3[%c13_60, %c0_61], %322 {strides = array<i32>} : memref<16x256xf32, #tpu.memory_space<vmem>>, vector<1x256xf32>,
    %323 = vector.extract_strided_slice %0 {offsets = [3, 0], sizes = [1, 256], strides = [1, 1]} : vector<6x256xf32> to vector<1x256xf32>
    %324 = vector.shape_cast %323 : vector<1x256xf32> to vector<256xf32>
    %c6_62 = arith.constant 6 : index
    %325 = memref.load %arg1[%c6_62] : memref<24xf32, #tpu.memory_space<smem>>
    %326 = vector.broadcast %325 : f32 to vector<256xf32>
    %327 = arith.mulf %324, %326 : vector<256xf32>
    %c6_63 = arith.constant 6 : index
    %328 = memref.load %arg2[%c6_63] : memref<8xf32, #tpu.memory_space<smem>>
    %329 = vector.broadcast %328 : f32 to vector<256xf32>
    %330 = arith.addf %327, %329 : vector<256xf32>
    %331 = vector.extract_strided_slice %0 {offsets = [4, 0], sizes = [1, 256], strides = [1, 1]} : vector<6x256xf32> to vector<1x256xf32>
    %332 = vector.shape_cast %331 : vector<1x256xf32> to vector<256xf32>
    %c14_64 = arith.constant 14 : index
    %333 = memref.load %arg1[%c14_64] : memref<24xf32, #tpu.memory_space<smem>>
    %334 = vector.broadcast %333 : f32 to vector<256xf32>
    %335 = arith.mulf %332, %334 : vector<256xf32>
    %336 = arith.addf %330, %335 : vector<256xf32>
    %337 = vector.extract_strided_slice %0 {offsets = [5, 0], sizes = [1, 256], strides = [1, 1]} : vector<6x256xf32> to vector<1x256xf32>
    %338 = vector.shape_cast %337 : vector<1x256xf32> to vector<256xf32>
    %c22_65 = arith.constant 22 : index
    %339 = memref.load %arg1[%c22_65] : memref<24xf32, #tpu.memory_space<smem>>
    %340 = vector.broadcast %339 : f32 to vector<256xf32>
    %341 = arith.mulf %338, %340 : vector<256xf32>
    %342 = arith.addf %336, %341 : vector<256xf32>
    %c14_66 = arith.constant 14 : index
    %c0_67 = arith.constant 0 : index
    %343 = vector.load %arg3[%c14_66, %c0_67] : memref<16x256xf32, #tpu.memory_space<vmem>>, vector<1x256xf32>
    %344 = vector.shape_cast %343 : vector<1x256xf32> to vector<256xf32>
    %345 = vector.shape_cast %342 : vector<256xf32> to vector<1x256xf32>
    tpu.vector_store %arg3[%c14_66, %c0_67], %345 {strides = array<i32>} : memref<16x256xf32, #tpu.memory_space<vmem>>, vector<1x256xf32>,
    %346 = vector.extract_strided_slice %0 {offsets = [3, 0], sizes = [1, 256], strides = [1, 1]} : vector<6x256xf32> to vector<1x256xf32>
    %347 = vector.shape_cast %346 : vector<1x256xf32> to vector<256xf32>
    %c7_68 = arith.constant 7 : index
    %348 = memref.load %arg1[%c7_68] : memref<24xf32, #tpu.memory_space<smem>>
    %349 = vector.broadcast %348 : f32 to vector<256xf32>
    %350 = arith.mulf %347, %349 : vector<256xf32>
    %c7_69 = arith.constant 7 : index
    %351 = memref.load %arg2[%c7_69] : memref<8xf32, #tpu.memory_space<smem>>
    %352 = vector.broadcast %351 : f32 to vector<256xf32>
    %353 = arith.addf %350, %352 : vector<256xf32>
    %354 = vector.extract_strided_slice %0 {offsets = [4, 0], sizes = [1, 256], strides = [1, 1]} : vector<6x256xf32> to vector<1x256xf32>
    %355 = vector.shape_cast %354 : vector<1x256xf32> to vector<256xf32>
    %c15_70 = arith.constant 15 : index
    %356 = memref.load %arg1[%c15_70] : memref<24xf32, #tpu.memory_space<smem>>
    %357 = vector.broadcast %356 : f32 to vector<256xf32>
    %358 = arith.mulf %355, %357 : vector<256xf32>
    %359 = arith.addf %353, %358 : vector<256xf32>
    %360 = vector.extract_strided_slice %0 {offsets = [5, 0], sizes = [1, 256], strides = [1, 1]} : vector<6x256xf32> to vector<1x256xf32>
    %361 = vector.shape_cast %360 : vector<1x256xf32> to vector<256xf32>
    %c23_71 = arith.constant 23 : index
    %362 = memref.load %arg1[%c23_71] : memref<24xf32, #tpu.memory_space<smem>>
    %363 = vector.broadcast %362 : f32 to vector<256xf32>
    %364 = arith.mulf %361, %363 : vector<256xf32>
    %365 = arith.addf %359, %364 : vector<256xf32>
    %c15_72 = arith.constant 15 : index
    %c0_73 = arith.constant 0 : index
    %366 = vector.load %arg3[%c15_72, %c0_73] : memref<16x256xf32, #tpu.memory_space<vmem>>, vector<1x256xf32>
    %367 = vector.shape_cast %366 : vector<1x256xf32> to vector<256xf32>
    %368 = vector.shape_cast %365 : vector<256xf32> to vector<1x256xf32>
    tpu.vector_store %arg3[%c15_72, %c0_73], %368 {strides = array<i32>} : memref<16x256xf32, #tpu.memory_space<vmem>>, vector<1x256xf32>,
    return
  }
}

</mosaic_0001>

<bundles_post_ra>
// kernel: tpu_custom_call.1
= control target key start
LH: loop header
LB: loop body
LE: loop exit
PB: predicated region body
PF: predicated region fallthrough
CT: control target
= control target key end

     0   :  { %8 = vsyncpa [#allocation3], 0  ;;  %s1338_s0 = inlined_call_operand.hbm [shape: f32[6,256], index: 0, kind: input, shape index: {}]   ;;  %s1339_s1 = inlined_call_operand.vmem [shape: f32[24], index: 1, kind: input, shape index: {}]   ;;  %s1340_s2 = inlined_call_operand.vmem [shape: f32[8], index: 2, kind: input, shape index: {}]   ;;  %s1341_s3 = inlined_call_operand.hbm [shape: f32[16,256], index: 3, kind: output, shape index: {}]  }
   0x1   :  { %9 = vsyncpa [#allocation5], 0 }
   0x2   :  { %10 = vsyncpa [#allocation8], 0 }
   0x3   :  { %11 = vsyncpa [#allocation4], 0  ;;  %s28_s14 = sshll.u32 %s1339_s1, 4  ;;  %s1079_s15 = smov [#allocation2]   ;;  %s29_s14 = int_to_ptr.vmem [resolvable:$true] %s28_s14 }
   0x4   :  { %s18_s16 = sshll.u32 %s1079_s15, 4  ;;  %s19_s16 = int_to_ptr.vmem [resolvable:$true] %s18_s16 }
   0x5   :  { %s1015_s17 = scalar_lea.vmem %s19_s16, 256  ;;  %p1020_p1 = scmp.lt.s32.totalorder %s19_s16, %s19_s16 }
   0x6   :  { %p1016_p0 = scmp.ne.s32.totalorder %s19_s16, %s1015_s17  ;;  %p1021_p2 = scmp.lt.s32.totalorder %s1015_s17, %s1015_s17 }
   0x8   :  { %p1022_p3 = por %p1021_p2, %p1020_p1 }
   0xa   :  { %p1023_p4 = pnand %p1022_p3, %p1016_p0 }
   0xc   :  { %1026 = shalt.err (!%p1023_p4)
}
   0xd   :  { %21 = dma.hbm_to_vmem [thread:$0]  %s1338_s0, 256, %s19_s16, [#allocation3]  }
   0xe   :  { %s1027_s20 = scalar_lea.vmem %s29_s14, 16  ;;  %p1032_p6 = scmp.lt.s32.totalorder %s29_s14, %s29_s14 }
   0xf   :  { %p1028_p5 = scmp.ne.s32.totalorder %s29_s14, %s1027_s20  ;;  %p1033_p7 = scmp.lt.s32.totalorder %s1027_s20, %s1027_s20 }
  0x11   :  { %p1034_p8 = por %p1033_p7, %p1032_p6 }
  0x13   :  { %p1035_p9 = pnand %p1034_p8, %p1028_p5 }
  0x15   :  { %1038 = shalt.err (!%p1035_p9)
}
  0x16   :  { %s1080_s1 = smov [#allocation6]   ;;  %s38_s23 = sshll.u32 %s1340_s2, 4  ;;  %s39_s23 = int_to_ptr.vmem [resolvable:$true] %s38_s23 }
  0x17   :  { %31 = dma.vmem_to_smem %s29_s14, 16, %s1080_s1, [#allocation5]  }
  0x18   :  { %s1039_s24 = scalar_lea.vmem %s39_s23, 16  ;;  %p1044_p11 = scmp.lt.s32.totalorder %s39_s23, %s39_s23 }
  0x19   :  { %p1040_p10 = scmp.ne.s32.totalorder %s39_s23, %s1039_s24  ;;  %p1045_p12 = scmp.lt.s32.totalorder %s1039_s24, %s1039_s24 }
  0x1b   :  { %p1046_p13 = por %p1045_p12, %p1044_p11 }
  0x1d   :  { %p1047_p0 = pnand %p1046_p13, %p1040_p10 }
  0x1f   :  { %1050 = shalt.err (!%p1047_p0)
}
  0x20   :  { %s1081_s0 = smov [#allocation7]  }
  0x21   :  { %41 = dma.vmem_to_smem %s39_s23, 16, %s1081_s0, [#allocation8]  }
  0x22   :  { %1071 = dma.done.wait [#allocation3], 256  }
  0x23   :  { %1072 = vsyncadd [#allocation3], 4294967040 }
  0x24   :  { %1073 = dma.done.wait [#allocation5], 16  }
  0x25   :  { %1074 = vsyncadd [#allocation5], 4294967280 }
  0x26   :  { %1075 = dma.done.wait [#allocation8], 16  }
  0x27   :  { %1076 = vsyncadd [#allocation8], 4294967280 }
  0x28   :  { %51 = sfence }
  0x29   :  { %s54_s25 = sld [smem:[#allocation6]]  ;;  %v1082_v0 = vmov 1966171168   ;;  %v92_v2 = vlaneseq  ;;  %v1115_v3 = vld [vmem:[#allocation2] sm:$0x3f] }
  0x2a   :  { %s58_s26 = sld [smem:[#allocation7]]  ;;  %v90_v1 = vunpack.c.l.s4 %v1082_v0  ;;  %v1117_v4 = vld [vmem:[#allocation2 + $0x8] sm:$0x3f] }
  0x2b   :  { %s940_s2 = sld [smem:[#allocation6 + $0x8]]  ;;  %v93_v7 = vshrl.u32 %v92_v2, 7  ;;  %vm1141_vm0 = vcmp.lt.s32.totalorder %v92_v2, 256 }
  0x2c   :  { %s941_s27 = sld [smem:[#allocation6 + $0x10]]  ;;  %v91_v6 = vunpack.c.0.s8 %v90_v1 }
  0x2d   :  { %s942_s28 = sld [smem:[#allocation6 + $0x1]] }
  0x2e   :  { %s1119_s29 = sld [smem:[#allocation7 + $0x1]]  ;;  %v1133_v17 = vsub.s32 %v91_v6, %v93_v7 }
  0x2f   :  { %v55_v5 = vstv %s54_s25  ;;  %s1121_s30 = sld [smem:[#allocation6 + $0x9]] }
  0x30   :  { %v56_v8 = vmul.f32 %v55_v5, %v1115_v3  ;;  %v57_v9 = vmul.f32 %v55_v5, %v1117_v4  ;;  %v59_v10 = vstv %s58_s26  ;;  %s1125_s4 = sld [smem:[#allocation6 + $0x11]] }
  0x31   :  { %v63_v11 = vstv %s940_s2  ;;  %s1127_s5 = sld [smem:[#allocation6 + $0x2]]  ;;  %s1083_s2 = smov [#allocation9]  }
  0x32   :  { %v60_v12 = vadd.f32 %v59_v10, %v56_v8  ;;  %v61_v13 = vadd.f32 %v59_v10, %v57_v9  ;;  %v64_v14 = vmul.f32 %v63_v11, %v1115_v3  ;;  %v65_v15 = vmul.f32 %v63_v11, %v1117_v4  ;;  %s1131_s6 = sld [smem:[#allocation7 + $0x2]] }
  0x33   :  { %v75_v16 = vstv %s941_s27  ;;  %v111_v18 = vstv %s942_s28  ;;  %s1135_s7 = sld [smem:[#allocation6 + $0xa]]  ;;  %s926_s27 = sshll.u32 %s1083_s2, 4  ;;  %s927_s27 = int_to_ptr.vmem [resolvable:$true] %s926_s27 }
  0x34   :  { %v68_v19 = vrot.slane %v64_v14, 1  ;;  %v69_v20 = vrot.slane %v65_v15, 1  ;;  %v76_v21 = vmul.f32 %v75_v16, %v1115_v3  ;;  %v77_v22 = vmul.f32 %v75_v16, %v1117_v4  ;;  %s1139_s8 = sld [smem:[#allocation6 + $0x12]]  ;;  %s1051_s28 = scalar_lea.vmem %s927_s27, 512 }
  0x35   :  { %v112_v24 = vmul.f32 %v111_v18, %v1115_v3  ;;  %v113_v25 = vmul.f32 %v111_v18, %v1117_v4  ;;  %v115_v26 = vstv %s1119_s29  ;;  %v119_v27 = vstv %s1121_s30  ;;  %s1149_s9 = sld [smem:[#allocation6 + $0x3]]  ;;  %p1052_p1 = scmp.ne.s32.totalorder %s927_s27, %s1051_s28 }
  0x36   :  { %v72_v28 = vadd.f32 %v68_v19, %v60_v12  ;;  %v73_v29 = vadd.f32 %v69_v20, %v61_v13  ;;  %v80_v30 = vrot.slane %v76_v21, 2  ;;  %v81_v31 = vrot.slane %v77_v22, 2  ;;  %s1151_s10 = sld [smem:[#allocation7 + $0x3]]  ;;  %p1056_p2 = scmp.lt.s32.totalorder %s927_s27, %s927_s27 }
  0x37   :  { %v116_v32 = vadd.f32 %v115_v26, %v112_v24  ;;  %v117_v33 = vadd.f32 %v115_v26, %v113_v25  ;;  %v120_v34 = vmul.f32 %v119_v27, %v1115_v3  ;;  %v121_v35 = vmul.f32 %v119_v27, %v1117_v4  ;;  %s1157_s11 = sld [smem:[#allocation6 + $0xb]]  ;;  %p1057_p3 = scmp.lt.s32.totalorder %s1051_s28, %s1051_s28 }
  0x38   :  { %v84_v36 = vadd.f32 %v80_v30, %v72_v28  ;;  %v85_v37 = vadd.f32 %v81_v31, %v73_v29  ;;  %v131_v38 = vstv %s1125_s4  ;;  %v164_v39 = vstv %s1127_s5  ;;  %s1164_s12 = sld [smem:[#allocation6 + $0x13]] }
  0x39   :  { %v124_v40 = vrot.slane %v120_v34, 1  ;;  %v125_v41 = vrot.slane %v121_v35, 1  ;;  %v132_v42 = vmul.f32 %v131_v38, %v1115_v3  ;;  %v133_v43 = vmul.f32 %v131_v38, %v1117_v4  ;;  %s1166_s13 = sld [smem:[#allocation6 + $0x4]]  ;;  %p1058_p4 = por %p1057_p3, %p1056_p2 }
  0x3a   :  { %v88_v44 = vcombine.low %v84_v36, %v85_v37  ;;  %v165_v45 = vmul.f32 %v164_v39, %v1115_v3  ;;  %v166_v46 = vmul.f32 %v164_v39, %v1117_v4  ;;  %v168_v47 = vstv %s1131_s6  ;;  %s1172_s14 = sld [smem:[#allocation7 + $0x4]] }
  0x3b   :  { %v128_v48 = vadd.f32 %v124_v40, %v116_v32  ;;  %v129_v49 = vadd.f32 %v125_v41, %v117_v33  ;;  %v136_v50 = vrot.slane %v132_v42, 2  ;;  %v137_v51 = vrot.slane %v133_v43, 2  ;;  %s1176_s15 = sld [smem:[#allocation6 + $0xc]]  ;;  %p1059_p5 = pnand %p1058_p4, %p1052_p1 }
  0x3c   :  { %v1169_v52 = vrot.slane %v88_v44, %v1133_v17  ;;  %v169_v53 = vadd.f32 %v168_v47, %v165_v45  ;;  %v170_v54 = vadd.f32 %v168_v47, %v166_v46  ;;  %v172_v55 = vstv %s1135_s7  ;;  %s1190_s16 = sld [smem:[#allocation6 + $0x14]] }
  0x3d   :  { %v140_v56 = vadd.f32 %v136_v50, %v128_v48  ;;  %v141_v57 = vadd.f32 %v137_v51, %v129_v49  ;;  %v173_v58 = vmul.f32 %v172_v55, %v1115_v3  ;;  %v174_v59 = vmul.f32 %v172_v55, %v1117_v4  ;;  %s1196_s17 = sld [smem:[#allocation6 + $0x5]] }
  0x3e   :  { %v102_v60 = vrot.slane %v1169_v52, %v1133_v17  ;;  %v184_v61 = vstv %s1139_s8  ;;  %v217_v62 = vstv %s1149_s9  ;;  %v221_v63 = vstv %s1151_s10  ;;  %s1202_s18 = sld [smem:[#allocation7 + $0x5]] }
  0x3f   :  { %v144_v0 = vcombine.low %v140_v56, %v141_v57  ;;  %v177_v1 = vrot.slane %v173_v58, 1  ;;  %v178_v2 = vrot.slane %v174_v59, 1  ;;  %v185_v5 = vmul.f32 %v184_v61, %v1115_v3  ;;  %s1206_s19 = sld [smem:[#allocation6 + $0xd]] }
  0x40   :  { %108 = vst.msk [vmem:[#allocation9] ss:$8 sm:$0x3] %vm1141_vm0, %v102_v60  ;;  %v186_v6 = vmul.f32 %v184_v61, %v1117_v4  ;;  %v218_v7 = vmul.f32 %v217_v62, %v1115_v3  ;;  %v219_v8 = vmul.f32 %v217_v62, %v1117_v4  ;;  %v225_v9 = vstv %s1157_s11  ;;  %s1213_s20 = sld [smem:[#allocation6 + $0x15]] }
  0x41   :  { %v1193_v10 = vrot.slane %v144_v0, %v1133_v17  ;;  %v181_v11 = vadd.f32 %v177_v1, %v169_v53  ;;  %v182_v12 = vadd.f32 %v178_v2, %v170_v54  ;;  %v189_v13 = vrot.slane %v185_v5, 2  ;;  %s1223_s1 = sld [smem:[#allocation6 + $0x6]] }
  0x42   :  { %v190_v14 = vrot.slane %v186_v6, 2  ;;  %v222_v15 = vadd.f32 %v221_v63, %v218_v7  ;;  %v223_v16 = vadd.f32 %v221_v63, %v219_v8  ;;  %v226_v18 = vmul.f32 %v225_v9, %v1115_v3  ;;  %s1225_s21 = sld [smem:[#allocation7 + $0x6]] }
  0x43   :  { %v158_v19 = vrot.slane %v1193_v10, %v1133_v17  ;;  %v193_v20 = vadd.f32 %v189_v13, %v181_v11  ;;  %v227_v21 = vmul.f32 %v225_v9, %v1117_v4  ;;  %v237_v22 = vstv %s1164_s12  ;;  %s1231_s22 = sld [smem:[#allocation6 + $0xe]] }
  0x44   :  { %v194_v24 = vadd.f32 %v190_v14, %v182_v12  ;;  %v230_v25 = vrot.slane %v226_v18, 1  ;;  %v238_v26 = vmul.f32 %v237_v22, %v1115_v3  ;;  %v239_v27 = vmul.f32 %v237_v22, %v1117_v4  ;;  %s1235_s23 = sld [smem:[#allocation6 + $0x16]] }
  0x45   :  { %161 = vst.msk [vmem:[#allocation9 + $0x1] ss:$8 sm:$0x3] %vm1141_vm0, %v158_v19  ;;  %v231_v28 = vrot.slane %v227_v21, 1  ;;  %v270_v29 = vstv %s1166_s13  ;;  %v274_v30 = vstv %s1172_s14  ;;  %v278_v31 = vstv %s1176_s15  ;;  %s1240_s24 = sld [smem:[#allocation6 + $0x7]] }
  0x46   :  { %v197_v32 = vcombine.low %v193_v20, %v194_v24  ;;  %v234_v33 = vadd.f32 %v230_v25, %v222_v15  ;;  %v242_v34 = vrot.slane %v238_v26, 2  ;;  %v243_v35 = vrot.slane %v239_v27, 2  ;;  %s1248_s0 = sld [smem:[#allocation7 + $0x7]] }
  0x47   :  { %v235_v36 = vadd.f32 %v231_v28, %v223_v16  ;;  %v271_v37 = vmul.f32 %v270_v29, %v1115_v3  ;;  %v272_v38 = vmul.f32 %v270_v29, %v1117_v4  ;;  %v279_v39 = vmul.f32 %v278_v31, %v1115_v3  ;;  %s1255_s25 = sld [smem:[#allocation6 + $0xf]] }
  0x48   :  { %v1219_v40 = vrot.slane %v197_v32, %v1133_v17  ;;  %v246_v41 = vadd.f32 %v242_v34, %v234_v33  ;;  %v280_v42 = vmul.f32 %v278_v31, %v1117_v4  ;;  %v290_v43 = vstv %s1190_s16  ;;  %s1267_s26 = sld [smem:[#allocation6 + $0x17]] }
  0x49   :  { %v247_v44 = vadd.f32 %v243_v35, %v235_v36  ;;  %v275_v45 = vadd.f32 %v274_v30, %v271_v37  ;;  %v276_v46 = vadd.f32 %v274_v30, %v272_v38  ;;  %v283_v47 = vrot.slane %v279_v39, 1 }
  0x4a   :  { %v211_v48 = vrot.slane %v1219_v40, %v1133_v17  ;;  %v284_v49 = vrot.slane %v280_v42, 1  ;;  %v291_v50 = vmul.f32 %v290_v43, %v1115_v3  ;;  %v292_v51 = vmul.f32 %v290_v43, %v1117_v4 }
  0x4b   :  { %v250_v53 = vcombine.low %v246_v41, %v247_v44  ;;  %v287_v54 = vadd.f32 %v283_v47, %v275_v45  ;;  %v323_v55 = vstv %s1196_s17  ;;  %v327_v56 = vstv %s1202_s18 }
  0x4c   :  { %214 = vst.msk [vmem:[#allocation9 + $0x2] ss:$8 sm:$0x3] %vm1141_vm0, %v211_v48  ;;  %v288_v57 = vadd.f32 %v284_v49, %v276_v46  ;;  %v295_v58 = vrot.slane %v291_v50, 2  ;;  %v296_v59 = vrot.slane %v292_v51, 2  ;;  %v324_v60 = vmul.f32 %v323_v55, %v1115_v3 }
  0x4d   :  { %v1243_v61 = vrot.slane %v250_v53, %v1133_v17  ;;  %v325_v62 = vmul.f32 %v323_v55, %v1117_v4  ;;  %v331_v63 = vstv %s1206_s19  ;;  %v343_v0 = vstv %s1213_s20 }
  0x4e   :  { %v299_v1 = vadd.f32 %v295_v58, %v287_v54  ;;  %v300_v2 = vadd.f32 %v296_v59, %v288_v57  ;;  %v328_v5 = vadd.f32 %v327_v56, %v324_v60  ;;  %v332_v6 = vmul.f32 %v331_v63, %v1115_v3 }
  0x4f   :  { %v264_v7 = vrot.slane %v1243_v61, %v1133_v17  ;;  %v329_v8 = vadd.f32 %v327_v56, %v325_v62  ;;  %v333_v9 = vmul.f32 %v331_v63, %v1117_v4  ;;  %v344_v11 = vmul.f32 %v343_v0, %v1115_v3 }
  0x50   :  { %v303_v12 = vcombine.low %v299_v1, %v300_v2  ;;  %v336_v13 = vrot.slane %v332_v6, 1  ;;  %v345_v14 = vmul.f32 %v343_v0, %v1117_v4  ;;  %v376_v15 = vstv %s1223_s1 }
  0x51   :  { %267 = vst.msk [vmem:[#allocation9 + $0x3] ss:$8 sm:$0x3] %vm1141_vm0, %v264_v7  ;;  %v337_v16 = vrot.slane %v333_v9, 1  ;;  %v348_v18 = vrot.slane %v344_v11, 2  ;;  %v377_v19 = vmul.f32 %v376_v15, %v1115_v3  ;;  %v378_v20 = vmul.f32 %v376_v15, %v1117_v4 }
  0x52   :  { %v1264_v21 = vrot.slane %v303_v12, %v1133_v17  ;;  %v340_v22 = vadd.f32 %v336_v13, %v328_v5  ;;  %v349_v24 = vrot.slane %v345_v14, 2  ;;  %v380_v25 = vstv %s1225_s21 }
  0x53   :  { %v341_v26 = vadd.f32 %v337_v16, %v329_v8  ;;  %v381_v27 = vadd.f32 %v380_v25, %v377_v19  ;;  %v382_v28 = vadd.f32 %v380_v25, %v378_v20  ;;  %v384_v29 = vstv %s1231_s22 }
  0x54   :  { %v317_v30 = vrot.slane %v1264_v21, %v1133_v17  ;;  %v352_v31 = vadd.f32 %v348_v18, %v340_v22  ;;  %v385_v32 = vmul.f32 %v384_v29, %v1115_v3  ;;  %v386_v33 = vmul.f32 %v384_v29, %v1117_v4 }
  0x55   :  { %v353_v34 = vadd.f32 %v349_v24, %v341_v26  ;;  %v396_v35 = vstv %s1235_s23  ;;  %v429_v36 = vstv %s1240_s24  ;;  %v433_v37 = vstv %s1248_s0 }
  0x56   :  { %320 = vst.msk [vmem:[#allocation9 + $0x4] ss:$8 sm:$0x3] %vm1141_vm0, %v317_v30  ;;  %v389_v38 = vrot.slane %v385_v32, 1  ;;  %v390_v39 = vrot.slane %v386_v33, 1  ;;  %v397_v41 = vmul.f32 %v396_v35, %v1115_v3  ;;  %v398_v42 = vmul.f32 %v396_v35, %v1117_v4 }
  0x57   :  { %v356_v43 = vcombine.low %v352_v31, %v353_v34  ;;  %v430_v44 = vmul.f32 %v429_v36, %v1115_v3  ;;  %v431_v45 = vmul.f32 %v429_v36, %v1117_v4  ;;  %v437_v46 = vstv %s1255_s25 }
  0x58   :  { %v393_v47 = vadd.f32 %v389_v38, %v381_v27  ;;  %v394_v48 = vadd.f32 %v390_v39, %v382_v28  ;;  %v401_v49 = vrot.slane %v397_v41, 2  ;;  %v402_v50 = vrot.slane %v398_v42, 2 }
  0x59   :  { %v363_v51 = vrot.slane %v356_v43, %v1133_v17  ;;  %v434_v53 = vadd.f32 %v433_v37, %v430_v44  ;;  %v435_v54 = vadd.f32 %v433_v37, %v431_v45  ;;  %v438_v55 = vmul.f32 %v437_v46, %v1115_v3 }
  0x5a   :  { %v405_v56 = vadd.f32 %v401_v49, %v393_v47  ;;  %v406_v57 = vadd.f32 %v402_v50, %v394_v48  ;;  %v439_v58 = vmul.f32 %v437_v46, %v1117_v4  ;;  %v449_v59 = vstv %s1267_s26 }
  0x5b   :  { %v370_v60 = vrot.slane %v363_v51, %v1133_v17  ;;  %v442_v62 = vrot.slane %v438_v55, 1  ;;  %v450_v63 = vmul.f32 %v449_v59, %v1115_v3  ;;  %v451_v0 = vmul.f32 %v449_v59, %v1117_v4 }
  0x5c   :  { %v409_v1 = vcombine.low %v405_v56, %v406_v57  ;;  %v443_v2 = vrot.slane %v439_v58, 1  ;;  %v523_v5 = vcombine.high %v1169_v52, %v1169_v52  ;;  %v578_v6 = vcombine.high %v1193_v10, %v1193_v10 }
  0x5d   :  { %373 = vst.msk [vmem:[#allocation9 + $0x5] ss:$8 sm:$0x3] %vm1141_vm0, %v370_v60  ;;  %v446_v7 = vadd.f32 %v442_v62, %v434_v53  ;;  %v454_v8 = vrot.slane %v450_v63, 2  ;;  %v455_v9 = vrot.slane %v451_v0, 2  ;;  %v633_v11 = vcombine.high %v1219_v40, %v1219_v40 }
  0x5e   :  { %v416_v3 = vrot.slane %v409_v1, %v1133_v17  ;;  %v447_v4 = vadd.f32 %v443_v2, %v435_v54  ;;  %v530_v12 = vrot.slane %v523_v5, %v1133_v17  ;;  %v585_v13 = vrot.slane %v578_v6, %v1133_v17 }
  0x5f   :  { %v458_v52 = vadd.f32 %v454_v8, %v446_v7  ;;  %v640_v14 = vrot.slane %v633_v11, %v1133_v17  ;;  %v688_v10 = vcombine.high %v1243_v61, %v1243_v61  ;;  %v743_v15 = vcombine.high %v1264_v21, %v1264_v21 }
  0x60   :  { %v423_v16 = vrot.slane %v416_v3, %v1133_v17  ;;  %v459_v18 = vadd.f32 %v455_v9, %v447_v4  ;;  %v531_v40 = vcombine.high %v530_v12, %v530_v12  ;;  %v586_v19 = vcombine.high %v585_v13, %v585_v13 }
  0x61   :  { %v641_v20 = vcombine.high %v640_v14, %v640_v14  ;;  %v695_v22 = vrot.slane %v688_v10, %v1133_v17  ;;  %v750_v24 = vrot.slane %v743_v15, %v1133_v17  ;;  %v798_v25 = vcombine.high %v363_v51, %v363_v51 }
  0x62   :  { %426 = vst.msk [vmem:[#allocation9 + $0x6] ss:$8 sm:$0x3] %vm1141_vm0, %v423_v16  ;;  %v462_v26 = vcombine.low %v458_v52, %v459_v18  ;;  %534 = vst.msk [vmem:[#allocation9 + $0x10] ss:$8 sm:$0x3] %vm1141_vm0, %v531_v40  ;;  %v853_v61 = vcombine.high %v416_v3, %v416_v3 }
  0x63   :  { %589 = vst.msk [vmem:[#allocation9 + $0x11] ss:$8 sm:$0x3] %vm1141_vm0, %v586_v19  ;;  %644 = vst.msk [vmem:[#allocation9 + $0x12] ss:$8 sm:$0x3] %vm1141_vm0, %v641_v20  ;;  %v696_v21 = vcombine.high %v695_v22, %v695_v22  ;;  %v751_v27 = vcombine.high %v750_v24, %v750_v24  ;;  %v805_v28 = vrot.slane %v798_v25, %v1133_v17 }
  0x64   :  { %v469_v29 = vrot.slane %v462_v26, %v1133_v17  ;;  %v860_v30 = vrot.slane %v853_v61, %v1133_v17 }
  0x65   :  { %699 = vst.msk [vmem:[#allocation9 + $0x13] ss:$8 sm:$0x3] %vm1141_vm0, %v696_v21  ;;  %754 = vst.msk [vmem:[#allocation9 + $0x14] ss:$8 sm:$0x3] %vm1141_vm0, %v751_v27  ;;  %v806_v31 = vcombine.high %v805_v28, %v805_v28 }
  0x66   :  { %v476_v32 = vrot.slane %v469_v29, %v1133_v17  ;;  %v861_v33 = vcombine.high %v860_v30, %v860_v30  ;;  %v908_v34 = vcombine.high %v469_v29, %v469_v29 }
  0x67   :  { %809 = vst.msk [vmem:[#allocation9 + $0x15] ss:$8 sm:$0x3] %vm1141_vm0, %v806_v31 }
  0x68   :  { %479 = vst.msk [vmem:[#allocation9 + $0x7] ss:$8 sm:$0x3] %vm1141_vm0, %v476_v32  ;;  %864 = vst.msk [vmem:[#allocation9 + $0x16] ss:$8 sm:$0x3] %vm1141_vm0, %v861_v33  ;;  %v915_v35 = vrot.slane %v908_v34, %v1133_v17 }
  0x6a   :  { %v916_v36 = vcombine.high %v915_v35, %v915_v35 }
  0x6c   :  { %919 = vst.msk [vmem:[#allocation9 + $0x17] ss:$8 sm:$0x3] %vm1141_vm0, %v916_v36 }
  0x6d   :  { %1062 = shalt.err (!%p1059_p5)
}
  0x6e   :  { %s1084_s29 = smov 256   ;;  %s1085_s30 = smov 16  }
  0x6f   :  { %932 = dma.vmem_to_hbm [thread:$0]  %s927_s27, 512, %s1341_s3, [#allocation4], %s1084_s29, %s1084_s29, %s1085_s30  }
  0x70   :  { %1077 = dma.done.wait [#allocation4], 512  }
  0x71   :  { %1078 = vsyncadd [#allocation4], 4294966784 }
  0x72   :  { %936 = vsyncpa [#allocation3], 1 }
  0x73   :  { %937 = vsyncpa [#allocation4], 1 }
  0x74   :  { %938 = vsyncpa [#allocation5], 1 }
  0x75   :  { %939 = vsyncpa [#allocation8], 1 }

</bundles_post_ra>
